<compile_context>
chip_gen: v7x
topology: tpu7x:2x2x1
jax: 0.10.0
libtpu: 0.0.40
codegen_flags: <defaults>
</compile_context>

<pallas_src>
import math
from functools import partial

import jax
import jax.numpy as jnp
from jax.experimental import pallas as pl
from jax.experimental.pallas import tpu as pltpu


def _vmem_limit_bytes():
    # Raise the scoped-VMEM limit above the 16-32 MiB default, but stay well under
    # the physical capacity of the chip (64 MiB/TC on v7x, 128 MiB on v5e/v6e).
    try:
        cap = int(pltpu.get_tpu_info().vmem_capacity_bytes)
        return int(min(cap * 3 // 4, 96 * 2 ** 20))
    except Exception:
        return 48 * 2 ** 20


# ----------------------------------------------------------------------------
# Kernel 1: rotation-parameter head (per-batch block, gridded over B)
# ----------------------------------------------------------------------------
def _rotation_params_kernel(x_ref, w1_ref, b1_ref, scale_ref, shift_ref,
                            w2_ref, b2_ref, out_ref):
    # x_ref:     (C, HW)   per-batch flattened input (HW on the lane dim)
    # w1_ref:    (16, C)   1x1 conv #1 weight
    # b1_ref:    (16, 1)
    # scale_ref: (16, 1)   BN (eval): gamma / sqrt(var + eps)
    # shift_ref: (16, 1)   BN (eval): beta - mean * scale
    # w2_ref:    (4, 16)   1x1 conv #2 weight
    # b2_ref:    (4, 1)
    # out_ref:   (4, 1)    rot_vec for this batch
    xf = x_ref[...]                                                       # (C, HW)
    h = jnp.dot(w1_ref[...], xf, preferred_element_type=jnp.float32) + b1_ref[...]
    h = jnp.maximum(h * scale_ref[...] + shift_ref[...], 0.0)             # BN + ReLU
    r = jnp.dot(w2_ref[...], h, preferred_element_type=jnp.float32) + b2_ref[...]
    m = jnp.max(r, axis=-1, keepdims=True)
    e = jnp.exp(r - m)
    s = jnp.sum(e, axis=-1, keepdims=True)
    sw = e * pl.reciprocal(s, approx=True)                                # softmax over HW
    out_ref[...] = jnp.sum(r * sw, axis=-1, keepdims=True)                # (4, 1)


def rotation_params_forward(x, p):
    """Returns (k, angle): normalized rotation axis (B, 3) and angle (B, 1)."""
    B, C, H, W = x.shape
    HW = H * W
    x_flat = x.reshape(B, C, HW).astype(jnp.float32)
    eps = 1e-5  # PyTorch BatchNorm2d default eps; eval-mode with running stats
    scale = (p["bn_gamma"] / jnp.sqrt(p["bn_var"] + eps)).reshape(16, 1)
    shift = (p["bn_beta"] - p["bn_mean"] * scale[:, 0]).reshape(16, 1)

    rot_vec = pl.pallas_call(
        _rotation_params_kernel,
        out_shape=jax.ShapeDtypeStruct((B, 4, 1), jnp.float32),
        grid=(B,),
        in_specs=[
            pl.BlockSpec((None, C, HW), lambda b: (b, 0, 0)),
            pl.BlockSpec((16, C), lambda b: (0, 0)),
            pl.BlockSpec((16, 1), lambda b: (0, 0)),
            pl.BlockSpec((16, 1), lambda b: (0, 0)),
            pl.BlockSpec((16, 1), lambda b: (0, 0)),
            pl.BlockSpec((4, 16), lambda b: (0, 0)),
            pl.BlockSpec((4, 1), lambda b: (0, 0)),
        ],
        out_specs=pl.BlockSpec((None, 4, 1), lambda b: (b, 0, 0)),
        compiler_params=pltpu.CompilerParams(dimension_semantics=("parallel",)),
    )(x_flat, p["w1"], p["b1"].reshape(16, 1), scale, shift,
      p["w2"], p["b2"].reshape(4, 1))
    rot_vec = rot_vec[..., 0]                                             # (B, 4)

    k = rot_vec[:, 0:3]
    angle = rot_vec[:, 3:4]
    norm_k = jnp.linalg.norm(k, axis=1, keepdims=True) + 1e-8
    k = k / norm_k
    angle = jnp.tanh(angle) * (jnp.pi / 4.0)
    return k, angle


# ----------------------------------------------------------------------------
# FFT-based weight rotation, mid-slice only (plain JAX glue — no Pallas FFT)
# ----------------------------------------------------------------------------
def approximate_rotation_matrix(k, angle):
    kx, ky, kz = k[:, 0], k[:, 1], k[:, 2]
    z = jnp.zeros_like(kx)
    Kmat = jnp.stack(
        [jnp.stack([z, -kz, ky], axis=-1),
         jnp.stack([kz, z, -kx], axis=-1),
         jnp.stack([-ky, kx, z], axis=-1)], axis=1)                       # (B, 3, 3)
    eye = jnp.eye(3, dtype=k.dtype)[None]
    return eye + angle[:, :, None] * Kmat                                 # (B, 3, 3)


def rotated_midslice_kernels(weights_3d, k, angle, mid):
    """Equivalent to rotate_weights_fft(...)[:, :, :, mid, :, :] of the reference,
    but only the (B, OC, ICg, K, K) mid depth slice is ever materialized:
    the depth-axis inverse DFT evaluated at index `mid` is folded into the phase,
    and the iFFT is then 2D instead of 3D."""
    # TODO(synk): FFT itself has no Pallas equivalent; kept as jnp.fft (XLA FFT).
    Ksize = weights_3d.shape[-1]
    wfft = jnp.fft.fftn(weights_3d, axes=(-3, -2, -1))                    # (OC,ICg,K,K,K) c64
    freq = jnp.fft.fftfreq(Ksize, d=1.0)
    fx, fy, fz = jnp.meshgrid(freq, freq, freq, indexing="ij")
    R = approximate_rotation_matrix(k, angle)                             # (B, 3, 3)
    # phase = exp(-2pi*i*(f'x + f'y + f'z)) with f' = R f  ->  the coefficients of
    # (fx, fy, fz) are the column sums of R.
    csum = jnp.sum(R, axis=1)                                             # (B, 3)
    a = csum[:, 0][:, None, None, None]
    b = csum[:, 1][:, None, None, None]
    c = csum[:, 2][:, None, None, None]
    phase = jnp.exp(-2j * jnp.pi * (fx[None] * a + fy[None] * b + fz[None] * c))
    # Depth-axis inverse DFT evaluated at index `mid` (includes the 1/K factor).
    depth_phase = jnp.exp(2j * jnp.pi * jnp.arange(Ksize) * mid / Ksize) / Ksize
    combined = phase * depth_phase[None, :, None, None]                   # (B, K, K, K)
    dsum = jnp.einsum("ocxyz,bxyz->bocyz", wfft, combined)                # (B,OC,ICg,K,K)
    twod = jnp.fft.ifftn(dsum, axes=(-2, -1)).real
    return twod.astype(weights_3d.dtype)                                  # (B,OC,ICg,K,K)


# ----------------------------------------------------------------------------
# Kernel 2: per-batch dynamic 2D convolution (im2col -> single MXU matmul)
# ----------------------------------------------------------------------------
def _dyn_conv2d_kernel(TOH, OW, K, G, dil, ICg, x_ref, w_ref, o_ref):
    # One (batch, row-strip, OC-tile) block:
    #   x_ref: (Hp, Wp, IC)      bf16 zero-padded NHWC image for this batch
    #   w_ref: (K, K, ICg, TOC)  bf16 per-batch rotated 2D kernels (OC tile)
    #   o_ref: (TOH, OW, TOC)    f32 output row strip
    r = pl.program_id(1)
    row0 = pl.multiple_of(r * TOH, TOH)
    w = w_ref[...]
    TOC = w.shape[-1]
    OCg = TOC // G

    for g in range(G):
        # im2col: gather the K*K shifted windows directly from the Ref (no
        # whole-image value copy) and fold them into one matmul whose
        # contraction depth is K*K*ICg instead of ICg.
        taps = []
        for kh in range(K):
            for kw in range(K):
                taps.append(x_ref[pl.ds(row0 + kh * dil, TOH),
                                  pl.ds(kw * dil, OW),
                                  pl.ds(g * ICg, ICg)])                   # (TOH,OW,ICg)
        col = jnp.concatenate(taps, axis=-1).reshape(TOH * OW, K * K * ICg)
        wg = w[:, :, :, g * OCg:(g + 1) * OCg].reshape(K * K * ICg, OCg)
        acc = jnp.dot(col, wg, preferred_element_type=jnp.float32)        # (TOH*OW,OCg)
        out = acc.reshape(TOH, OW, OCg).astype(o_ref.dtype)
        if G == 1:
            o_ref[...] = out
        else:
            # TODO(synk): for groups > 1, moving the group dim into the grid would
            # make these lane slices 128-aligned (masked stores otherwise).
            o_ref[:, :, g * OCg:(g + 1) * OCg] = out


def batched_dynamic_conv2d(x, w2d, stride=1, padding=1, dilation=1, groups=1,
                           row_tile=None):
    """x: (B, IC, H, W) NCHW; w2d: (B, OC, IC//groups, K, K) -> (B, OC, OH, OW)."""
    B, IC, H, W = x.shape
    _, OC, ICg, K, _ = w2d.shape
    assert stride == 1  # TODO(synk): stride > 1 output subsampling not implemented
    OH = (H + 2 * padding - dilation * (K - 1) - 1) // stride + 1
    OW = (W + 2 * padding - dilation * (K - 1) - 1) // stride + 1
    Hp, Wp = H + 2 * padding, W + 2 * padding

    # bf16 activations / weights feeding the MXU; accumulation stays fp32.
    x_nhwc = jnp.transpose(x, (0, 2, 3, 1)).astype(jnp.bfloat16)
    # TODO(synk): zero-pad still costs one HBM round trip; folding the halo into the
    # BlockSpec index_map with in-kernel boundary masking would remove it.
    x_pad = jnp.pad(x_nhwc, ((0, 0), (padding, padding), (padding, padding), (0, 0)))
    w_t = jnp.transpose(w2d, (0, 3, 4, 2, 1)).astype(jnp.bfloat16)        # (B,K,K,ICg,OC)

    # Output row-strip tiling (keeps per-step blocks small and the pipeline deep).
    if row_tile is None:
        row_tile = OH
        for cand in range(OH, 0, -1):
            if OH % cand == 0 and cand * OW <= 512:
                row_tile = cand
                break
    assert OH % row_tile == 0
    n_row = OH // row_tile

    # OC tiling (lane-dense, multiple of 128) when it divides evenly; groups > 1
    # keeps the full OC per block and loops over groups in-kernel.
    toc = OC
    if groups == 1 and OC > 128 and OC % 128 == 0:
        toc = 256 if OC % 256 == 0 else 128
    n_oc = OC // toc

    out_nhwc = pl.pallas_call(
        partial(_dyn_conv2d_kernel, row_tile, OW, K, groups, dilation, ICg),
        out_shape=jax.ShapeDtypeStruct((B, OH, OW, OC), jnp.float32),
        grid=(B, n_row, n_oc),
        in_specs=[
            pl.BlockSpec((None, Hp, Wp, IC), lambda b, r, o: (b, 0, 0, 0)),
            pl.BlockSpec((None, K, K, ICg, toc), lambda b, r, o: (b, 0, 0, 0, o)),
        ],
        out_specs=pl.BlockSpec((None, row_tile, OW, toc),
                               lambda b, r, o: (b, r, 0, o)),
        compiler_params=pltpu.CompilerParams(
            dimension_semantics=("parallel", "parallel", "parallel"),
            vmem_limit_bytes=_vmem_limit_bytes()),
    )(x_pad, w_t)
    return jnp.transpose(out_nhwc, (0, 3, 1, 2)).astype(x.dtype)          # NCHW


# ----------------------------------------------------------------------------
# Parameter init (deterministic, synthetic) + full forward
# ----------------------------------------------------------------------------
def init_params(key, in_channels, out_channels, kernel_size, groups=1):
    k1, k2, k3, k4, k5 = jax.random.split(key, 5)
    fan_out = out_channels * kernel_size ** 3                 # kaiming, mode='fan_out'
    std = math.sqrt(2.0 / fan_out)
    weights_3d = std * jax.random.normal(
        k1, (out_channels, in_channels // groups,
             kernel_size, kernel_size, kernel_size), dtype=jnp.float32)
    return {
        "weights_3d": weights_3d,
        "w1": jax.random.normal(k2, (16, in_channels), jnp.float32) / math.sqrt(in_channels),
        "b1": 0.1 * jax.random.normal(k3, (16,), jnp.float32),
        # BatchNorm2d(16) in eval mode with default running stats / affine params.
        "bn_gamma": jnp.ones((16,), jnp.float32),
        "bn_beta": jnp.zeros((16,), jnp.float32),
        "bn_mean": jnp.zeros((16,), jnp.float32),
        "bn_var": jnp.ones((16,), jnp.float32),
        "w2": jax.random.normal(k4, (4, 16), jnp.float32) / 4.0,
        "b2": 0.1 * jax.random.normal(k5, (4,), jnp.float32),
    }


def crossd_conv_forward(params, x, *, kernel_size=3, stride=1, padding=1,
                        dilation=1, groups=1, row_tile=None):
    k, angle = rotation_params_forward(x, params)
    mid = kernel_size // 2
    twod = rotated_midslice_kernels(params["weights_3d"], k, angle, mid)  # (B,OC,ICg,K,K)
    return batched_dynamic_conv2d(x, twod, stride=stride, padding=padding,
                                  dilation=dilation, groups=groups,
                                  row_tile=row_tile)


if __name__ == "__main__":
    B, C_in, C_out, K, H, W = 2, 4, 8, 3, 16, 16
    key = jax.random.PRNGKey(0)
    kp, kx = jax.random.split(key)
    params = init_params(kp, C_in, C_out, K)
    x = jax.random.normal(kx, (B, C_in, H, W), dtype=jnp.float32)

    # row_tile=8 exercises the multi-row-strip grid path even at this toy size.
    out = crossd_conv_forward(params, x, kernel_size=K, stride=1, padding=1,
                              dilation=1, groups=1, row_tile=8)
    out = jax.block_until_ready(out)

    assert out.shape == (B, C_out, H, W), out.shape
    assert bool(jnp.all(jnp.isfinite(out)))
    print("KERNEL_OK")
</pallas_src>

<mosaic_0001>
module attributes {stable_mosaic.version = 11 : i64} {
  func.func @_rotation_params_kernel(%arg0: i32, %arg1: memref<1x4x256xf32, #tpu.memory_space<vmem>>, %arg2: memref<16x4xf32, #tpu.memory_space<vmem>>, %arg3: memref<16x1xf32, #tpu.memory_space<vmem>>, %arg4: memref<16x1xf32, #tpu.memory_space<vmem>>, %arg5: memref<16x1xf32, #tpu.memory_space<vmem>>, %arg6: memref<4x16xf32, #tpu.memory_space<vmem>>, %arg7: memref<4x1xf32, #tpu.memory_space<vmem>>, %arg8: memref<1x4x1xf32, #tpu.memory_space<vmem>>) attributes {dimension_semantics = [#tpu.dimension_semantics<parallel>], iteration_bounds = array<i64: 2>, scalar_prefetch = 0 : i64, scratch_operands = 0 : i64, tpu.core_type = #tpu.core_type<tc>, window_params = [{transform_indices = @transform_0, window_bounds = array<i64: 1, 4, 256>}, {pipeline_mode = #tpu.pipeline_mode<synchronous>, transform_indices = @transform_1, window_bounds = array<i64: 16, 4>}, {pipeline_mode = #tpu.pipeline_mode<synchronous>, transform_indices = @transform_2, window_bounds = array<i64: 16, 1>}, {pipeline_mode = #tpu.pipeline_mode<synchronous>, transform_indices = @transform_3, window_bounds = array<i64: 16, 1>}, {pipeline_mode = #tpu.pipeline_mode<synchronous>, transform_indices = @transform_4, window_bounds = array<i64: 16, 1>}, {pipeline_mode = #tpu.pipeline_mode<synchronous>, transform_indices = @transform_5, window_bounds = array<i64: 4, 16>}, {pipeline_mode = #tpu.pipeline_mode<synchronous>, transform_indices = @transform_6, window_bounds = array<i64: 4, 1>}, {transform_indices = @transform_7, window_bounds = array<i64: 1, 4, 1>}]} {
    %c0 = arith.constant 0 : index
    %c0_0 = arith.constant 0 : index
    %c0_1 = arith.constant 0 : index
    %0 = vector.load %arg1[%c0, %c0_0, %c0_1] : memref<1x4x256xf32, #tpu.memory_space<vmem>>, vector<1x4x256xf32>
    %1 = vector.shape_cast %0 : vector<1x4x256xf32> to vector<4x256xf32>
    %c0_2 = arith.constant 0 : index
    %c0_3 = arith.constant 0 : index
    %2 = vector.load %arg2[%c0_2, %c0_3] : memref<16x4xf32, #tpu.memory_space<vmem>>, vector<16x4xf32>
    %cst = arith.constant dense<0.000000e+00> : vector<16x256xf32>
    %3 = tpu.matmul %2, %1, %cst {dimension_numbers = #tpu.dot_dimension_numbers<[1], [0], [0], [1], [0, 0, 1, 1], [], []>} : vector<16x4xf32>, vector<4x256xf32>, vector<16x256xf32> -> vector<16x256xf32>
    %c0_4 = arith.constant 0 : index
    %c0_5 = arith.constant 0 : index
    %4 = vector.load %arg3[%c0_4, %c0_5] : memref<16x1xf32, #tpu.memory_space<vmem>>, vector<16x1xf32>
    %5 = vector.broadcast %4 : vector<16x1xf32> to vector<16x256xf32>
    %6 = arith.addf %3, %5 : vector<16x256xf32>
    %c0_6 = arith.constant 0 : index
    %c0_7 = arith.constant 0 : index
    %7 = vector.load %arg4[%c0_6, %c0_7] : memref<16x1xf32, #tpu.memory_space<vmem>>, vector<16x1xf32>
    %8 = vector.broadcast %7 : vector<16x1xf32> to vector<16x256xf32>
    %9 = arith.mulf %6, %8 : vector<16x256xf32>
    %c0_8 = arith.constant 0 : index
    %c0_9 = arith.constant 0 : index
    %10 = vector.load %arg5[%c0_8, %c0_9] : memref<16x1xf32, #tpu.memory_space<vmem>>, vector<16x1xf32>
    %11 = vector.broadcast %10 : vector<16x1xf32> to vector<16x256xf32>
    %12 = arith.addf %9, %11 : vector<16x256xf32>
    %cst_10 = arith.constant 0.000000e+00 : f32
    %13 = vector.broadcast %cst_10 : f32 to vector<16x256xf32>
    %14 = arith.maximumf %12, %13 : vector<16x256xf32>
    %c0_11 = arith.constant 0 : index
    %c0_12 = arith.constant 0 : index
    %15 = vector.load %arg6[%c0_11, %c0_12] : memref<4x16xf32, #tpu.memory_space<vmem>>, vector<4x16xf32>
    %cst_13 = arith.constant dense<0.000000e+00> : vector<4x256xf32>
    %16 = tpu.matmul %15, %14, %cst_13 {dimension_numbers = #tpu.dot_dimension_numbers<[1], [0], [0], [1], [0, 0, 1, 1], [], []>} : vector<4x16xf32>, vector<16x256xf32>, vector<4x256xf32> -> vector<4x256xf32>
    %c0_14 = arith.constant 0 : index
    %c0_15 = arith.constant 0 : index
    %17 = vector.load %arg7[%c0_14, %c0_15] : memref<4x1xf32, #tpu.memory_space<vmem>>, vector<4x1xf32>
    %18 = vector.broadcast %17 : vector<4x1xf32> to vector<4x256xf32>
    %19 = arith.addf %16, %18 : vector<4x256xf32>
    %cst_16 = arith.constant dense<0xFF800000> : vector<4xf32>
    %20 = vector.multi_reduction <maximumf>, %19, %cst_16 [1] : vector<4x256xf32> to vector<4xf32>
    %21 = vector.shape_cast %20 : vector<4xf32> to vector<4x1xf32>
    %22 = vector.broadcast %21 : vector<4x1xf32> to vector<4x256xf32>
    %23 = arith.subf %19, %22 : vector<4x256xf32>
    %24 = math.exp %23 : vector<4x256xf32>
    %cst_17 = arith.constant dense<0.000000e+00> : vector<4xf32>
    %25 = vector.multi_reduction <add>, %24, %cst_17 [1] : vector<4x256xf32> to vector<4xf32>
    %26 = vector.shape_cast %25 : vector<4xf32> to vector<4x1xf32>
    %27 = tpu.reciprocal %26 {approx = true} : vector<4x1xf32> -> vector<4x1xf32>
    %28 = vector.broadcast %27 : vector<4x1xf32> to vector<4x256xf32>
    %29 = arith.mulf %24, %28 : vector<4x256xf32>
    %30 = arith.mulf %19, %29 : vector<4x256xf32>
    %cst_18 = arith.constant dense<0.000000e+00> : vector<4xf32>
    %31 = vector.multi_reduction <add>, %30, %cst_18 [1] : vector<4x256xf32> to vector<4xf32>
    %32 = vector.shape_cast %31 : vector<4xf32> to vector<4x1xf32>
    %c0_19 = arith.constant 0 : index
    %c0_20 = arith.constant 0 : index
    %c0_21 = arith.constant 0 : index
    %33 = vector.load %arg8[%c0_19, %c0_20, %c0_21] : memref<1x4x1xf32, #tpu.memory_space<vmem>>, vector<1x4x1xf32>
    %34 = vector.shape_cast %33 : vector<1x4x1xf32> to vector<4x1xf32>
    %35 = vector.shape_cast %32 : vector<4x1xf32> to vector<1x4x1xf32>
    tpu.vector_store %arg8[%c0_19, %c0_20, %c0_21], %35 {strides = array<i32>} : memref<1x4x1xf32, #tpu.memory_space<vmem>>, vector<1x4x1xf32>,
    return
  }
  func.func @transform_0(%arg0: i32) -> (i32, i32, i32) {
    %c0_i32 = arith.constant 0 : i32
    %c0_i32_0 = arith.constant 0 : i32
    %c0_i32_1 = arith.constant 0 : i32
    return %arg0, %c0_i32, %c0_i32_0 : i32, i32, i32
  }
  func.func @transform_1(%arg0: i32) -> (i32, i32) {
    %c0_i32 = arith.constant 0 : i32
    %c0_i32_0 = arith.constant 0 : i32
    %c0_i32_1 = arith.constant 0 : i32
    return %c0_i32, %c0_i32_0 : i32, i32
  }
  func.func @transform_2(%arg0: i32) -> (i32, i32) {
    %c0_i32 = arith.constant 0 : i32
    %c0_i32_0 = arith.constant 0 : i32
    %c0_i32_1 = arith.constant 0 : i32
    return %c0_i32, %c0_i32_0 : i32, i32
  }
  func.func @transform_3(%arg0: i32) -> (i32, i32) {
    %c0_i32 = arith.constant 0 : i32
    %c0_i32_0 = arith.constant 0 : i32
    %c0_i32_1 = arith.constant 0 : i32
    return %c0_i32, %c0_i32_0 : i32, i32
  }
  func.func @transform_4(%arg0: i32) -> (i32, i32) {
    %c0_i32 = arith.constant 0 : i32
    %c0_i32_0 = arith.constant 0 : i32
    %c0_i32_1 = arith.constant 0 : i32
    return %c0_i32, %c0_i32_0 : i32, i32
  }
  func.func @transform_5(%arg0: i32) -> (i32, i32) {
    %c0_i32 = arith.constant 0 : i32
    %c0_i32_0 = arith.constant 0 : i32
    %c0_i32_1 = arith.constant 0 : i32
    return %c0_i32, %c0_i32_0 : i32, i32
  }
  func.func @transform_6(%arg0: i32) -> (i32, i32) {
    %c0_i32 = arith.constant 0 : i32
    %c0_i32_0 = arith.constant 0 : i32
    %c0_i32_1 = arith.constant 0 : i32
    return %c0_i32, %c0_i32_0 : i32, i32
  }
  func.func @transform_7(%arg0: i32) -> (i32, i32, i32) {
    %c0_i32 = arith.constant 0 : i32
    %c0_i32_0 = arith.constant 0 : i32
    %c0_i32_1 = arith.constant 0 : i32
    return %arg0, %c0_i32, %c0_i32_0 : i32, i32, i32
  }
}

</mosaic_0001>

<bundles_post_ra>
// kernel: tpu_custom_call.1
= control target key start
LH: loop header
LB: loop body
LE: loop exit
PB: predicated region body
PF: predicated region fallthrough
CT: control target
= control target key end

     0   :  { %s671_s24 = smov 0   ;;  %s730_s0 = inlined_call_operand.vmem [shape: f32[2,4,256], index: 0, kind: input, shape index: {}]   ;;  %s731_s1 = inlined_call_operand.vmem [shape: f32[16,4], index: 1, kind: input, shape index: {}]   ;;  %s732_s2 = inlined_call_operand.vmem [shape: f32[16,1], index: 2, kind: input, shape index: {}]   ;;  %s733_s3 = inlined_call_operand.vmem [shape: f32[16,1], index: 3, kind: input, shape index: {}]   ;;  %s734_s4 = inlined_call_operand.vmem [shape: f32[16,1], index: 4, kind: input, shape index: {}]   ;;  %s735_s5 = inlined_call_operand.vmem [shape: f32[4,16], index: 5, kind: input, shape index: {}]   ;;  %s736_s6 = inlined_call_operand.vmem [shape: f32[4,1], index: 6, kind: input, shape index: {}]   ;;  %s737_s7 = inlined_call_operand.vmem [shape: f32[2,4,1], index: 7, kind: output, shape index: {}]  }
   0x1 LB: > { %s582_s25 = sadd.s32 4294967295, %s627_s24   ;;  %p586_p0 = scmp.ge.s32.totalorder %s627_s24, 1  ;;  %s627_s24 = sphi %s671_s24, %s17_s24  }
   0x2   : > { %p237_p1 = scmp.lt.s32.totalorder %s627_s24, 3 }
   0x4   : > { %p238_p2 = pnand %p586_p0, %p237_p1 }
   0x5   : > { %p268_p3 = scmp.lt.s32.totalorder (!%p238_p2), %s582_s25, 1  ;;  %v629_v0 = vmov (!%p238_p2), 0.0   ;;  %v280_v1 = vld [vmem:[%s732_s2] sm:$0xff] (!%p238_p2)  ;;  %v630_v3 = vmov (!%p238_p2), 0   ;;  %v281_v4 = vld [vmem:[%s732_s2 + $0x8] sm:$0xff] (!%p238_p2)  ;;  %vm301_vm0 = vcmask (!%p238_p2), 1043456  }
   0x6   : > { %241 = sbr.rel (%p238_p2) target bundleno = 934 (0x3a6), region = 48  ;;  %370 = vmatprep.mubr.f32.mxu0 (!%p238_p2), %v629_v0  ;;  %v383_v2 = vld [vmem:[%s733_s3] sm:$0xff] (!%p238_p2)  ;;  %494 = vmatprep.mubr.f32.mxu1 (!%p238_p2), %v629_v0  ;;  %v384_v5 = vld [vmem:[%s733_s3 + $0x8] sm:$0xff] (!%p238_p2)  ;;  %vm294_vm1 = vcmask (!%p238_p2), 31744   ;;  %vm426_vm2 = vcmask (!%p238_p2), 130048   ;;  %vm527_vm3 = vcmask (!%p238_p2), 3072  }
   0x7   : > { %612 = vset.pattern.permute.xlu0 (!%p238_p2), %v630_v3  ;;  %613 = vset.pattern.permute.xlu1 (!%p238_p2), %v630_v3  ;;  %v278_v8 = vld [vmem:[%s731_s1] sm:$0xff] (!%p238_p2)  ;;  %v400_v10 = vld [vmem:[%s734_s4 + $0x8] sm:$0xff] (!%p238_p2) }
   0x8   : > { %284 = vperm.xlu0 (!%p238_p2), %612, %v280_v1   ;;  %387 = vperm.xlu1 (!%p238_p2), %613, %v383_v2   ;;  %v399_v9 = vld [vmem:[%s734_s4] sm:$0xff] (!%p238_p2)  ;;  %v279_v11 = vld [vmem:[%s731_s1 + $0x8] sm:$0xff] (!%p238_p2) }
   0x9   : > { %v420_v12 = vld [vmem:[%s736_s6] sm:$0xf] (!%p238_p2) }
   0xa   : > { %v419_v41 = vld [vmem:[%s735_s5] sm:$0xf] (!%p238_p2) }
   0xc   : > { %289 = vperm.xlu0 (!%p238_p2), %612, %v281_v4   ;;  %392 = vperm.xlu1 (!%p238_p2), %613, %v384_v5  }
   0xd   : > { %s739_s25 = smov (!%p268_p3, %s582_s25), 1 }
   0xe   : > { %s597_s30 = sshll.u32 %s739_s25, 3  ;;  %s589_s29 = sshll.u32 %s739_s25, 2 }
   0xf   : > { %s272_s14 = scalar_lea.vmem %s730_s0, %s597_s30  ;;  %s276_s9 = scalar_lea.vmem %s737_s7, %s589_s29 }
  0x10   : > { %v277_v6 = vld [vmem:[%s272_s14] sm:$0xff]  ;;  %403 = vperm.xlu0 %612, %v399_v9   ;;  %408 = vperm.xlu1 %613, %v400_v10  }
  0x11   : > { %v293_v7 = vcombine.high %v277_v6, %v277_v6 }
  0x13   : > { %590 = vmatprep.subr.msk.mxu0 %vm301_vm0, %v293_v7 }
  0x14   : > { %591 = vmatpush1.msk.msra.mxu0 %vm301_vm0, %v277_v6  ;;  %423 = vperm.xlu0 %612, %v420_v12  }
  0x15   : > { %592 = vmatmul.mubr.msk.f32.vlgmr.msra.gmra.mrb[0].mxu0 %vm294_vm1, %v278_v8 }
  0x16   : > { %376 = vmatprep.mubr.f32.mxu0 %v629_v0 }
  0x19   : > { %593 = vmatmul.mubr.msk.f32.gmra.mrb[2].mxu0 %vm294_vm1, %v279_v11 }
  0x87   : > { %v285_v13 = vpop.permute.xlu0 %284  ;;  %v388_v14 = vpop.permute.xlu1 %387 }
  0x8b   : > { %v290_v15 = vpop.permute.xlu0 %289  ;;  %v393_v19 = vpop.permute.xlu1 %392 }
  0x8f   : > { %v404_v26 = vpop.permute.xlu0 %403  ;;  %v409_v30 = vpop.permute.xlu1 %408 }
  0x93   : > { %v424_v42 = vpop.permute.xlu0 %423 }
  0xe8   : > { %v372_v16 = vpop.f32.mrb[0].mxu0 }
  0xe9   : > { %v373_v17 = vadd.f32 %v372_v16, %v285_v13  ;;  %v374_v18 = vpop.f32.mrb[1].mxu0 }
  0xea   : > { %v375_v20 = vadd.f32 %v374_v18, %v285_v13 }
  0xeb   : > { %v395_v21 = vmul.f32 %v388_v14, %v373_v17 }
  0xec   : > { %v396_v22 = vmul.f32 %v388_v14, %v375_v20  ;;  %v378_v23 = vpop.f32.mrb[2].mxu0 }
  0xed   : > { %v379_v24 = vadd.f32 %v378_v23, %v290_v15  ;;  %v380_v25 = vpop.f32.mrb[3].mxu0  ;;  %v411_v29 = vadd.f32 %v404_v26, %v395_v21 }
  0xee   : > { %v381_v27 = vadd.f32 %v380_v25, %v290_v15  ;;  %v412_v32 = vadd.f32 %v404_v26, %v396_v22 }
  0xef   : > { %v397_v28 = vmul.f32 %v393_v19, %v379_v24  ;;  %v415_v35 = vmax.f32 %v411_v29, 0.0 }
  0xf0   : > { %v398_v31 = vmul.f32 %v393_v19, %v381_v27  ;;  %v416_v37 = vmax.f32 %v412_v32, 0.0 }
  0xf1   : > { %v413_v33 = vadd.f32 %v409_v30, %v397_v28 }
  0xf2   : > { %v414_v34 = vadd.f32 %v409_v30, %v398_v31 }
  0xf3   : > { %v417_v36 = vmax.f32 %v413_v33, 0.0 }
  0xf4   : > { %v418_v38 = vmax.f32 %v414_v34, 0.0 }
  0xf5   : > { %v600_v39 = vpack.c.bf16 %v417_v36, %v415_v35 }
  0xf6   : > { %v598_v40 = vpack.c.bf16 %v418_v38, %v416_v37 }
  0xf8   : > { %599 = vmatprep.subr.bf16.mxu1 %v598_v40 }
  0xf9   : > { %601 = vmatpush1.bf16.msra.mxu1 %v600_v39 }
  0xfc   : > { %594 = vmatmul.mubr.msk.f32.vlgmr.msra.gmra.mrb[0].mxu1 %vm426_vm2, %v419_v41 }
 0x1cf   : > { %v496_v43 = vpop.f32.mrb[0].mxu1 }
 0x1d0   : > { %v497_v44 = vadd.f32 %v496_v43, %v424_v42  ;;  %v498_v45 = vpop.f32.mrb[1].mxu1 }
 0x1d1   : > { %v499_v46 = vadd.f32 %v498_v45, %v424_v42 }
 0x1d2   : > { %v501_v47 = vsel %vm301_vm0, %v497_v44, -inf }
 0x1d3   : > { %v502_v48 = vsel %vm301_vm0, %v499_v46, -inf }
 0x1d4   : > { %v503_v49 = vmax.f32 %v501_v47, %v502_v48 }
 0x1d6   : > { %504 = vmax.xlane.f32.xlu1 %v503_v49 }
 0x263   : > { %v505_v50 = vpop.xlane.xlu1 %504 }
 0x264   : > { %v506_v51 = vsub.f32 %v497_v44, %v505_v50  ;;  %v507_v52 = vsub.f32 %v499_v46, %v505_v50 }
 0x266   : > { %v508_v53 = vmul.f32 1.442695, %v506_v51  ;;  %v510_v54 = vmul.f32 1.442695, %v507_v52 }
 0x268   : > { %615 = vpow2.f32 %v508_v53 }
 0x269   : > { %617 = vpow2.f32 %v510_v54 }
 0x272   : > { %v616_v55 = vpop.eup %615 }
 0x273   : > { %v618_v56 = vpop.eup %617  ;;  %v512_v57 = vsel %vm301_vm0, %v616_v55, 0.0 }
 0x274   : > { %v513_v58 = vsel %vm301_vm0, %v618_v56, 0.0 }
 0x275   : > { %v514_v59 = vadd.f32 %v513_v58, %v512_v57 }
 0x277   : > { %515 = vadd.xlane.f32.xlu0 %v514_v59 }
 0x304   : > { %v516_v60 = vpop.xlane.xlu0 %515 }
 0x305   : > { %619 = vrcp.f32 %v516_v60 }
 0x30f   : > { %v620_v61 = vpop.eup %619 }
 0x310   : > { %v518_v62 = vmul.f32 %v620_v61, %v616_v55  ;;  %v519_v63 = vmul.f32 %v620_v61, %v618_v56 }
 0x312   : > { %v520_v0 = vmul.f32 %v518_v62, %v497_v44  ;;  %v521_v1 = vmul.f32 %v519_v63, %v499_v46 }
 0x314   : > { %v522_v2 = vsel %vm301_vm0, %v520_v0, 0.0  ;;  %v523_v3 = vsel %vm301_vm0, %v521_v1, 0.0 }
 0x315   : > { %v524_v4 = vadd.f32 %v523_v3, %v522_v2 }
 0x317   : > { %525 = vadd.xlane.f32.xlu0 %v524_v4 }
 0x3a4   : > { %v526_v5 = vpop.xlane.xlu0 %525 }
 0x3a5   : > { %528 = vst.msk [vmem:[%s276_s9] sm:$0xf] %vm527_vm3, %v526_v5 }
 0x3a6 PF: > { %s17_s24 = sadd.s32 1, %s627_s24  }
 0x3a7   : > { %p14_p4 = scmp.ge.s32.totalorder %s17_s24, 4  }
 0x3a9   :  { %16 = sbr.rel (!%p14_p4) target bundleno = 1 (0x1), region = 78 }

</bundles_post_ra>
